<compile_context>
chip_gen: v6e
topology: v6e:2x2x1
jax: 0.10.0
libtpu: 0.0.40
codegen_flags: <defaults>
</compile_context>

<pallas_src>
import math
from typing import NamedTuple

import jax
import jax.numpy as jnp
from jax.experimental import pallas as pl
from jax.experimental.pallas import tpu as pltpu


# ----------------------------------------------------------------------------
# Helpers
# ----------------------------------------------------------------------------
def _round_up(x, m):
    return ((x + m - 1) // m) * m


def _sublane_multiple(dtype):
    # Packed dtypes need taller sublane tiles: 8 (f32), 16 (bf16), 32 (int8).
    return max(8, 32 // jnp.dtype(dtype).itemsize)


class IgnoreLinearParams(NamedTuple):
    """Weight/bias pre-processed once (transpose + pad + dtype cast)."""
    w_padded: jax.Array   # (Kp, Np), compute dtype, already W^T
    b_padded: jax.Array   # (1, Np), float32
    K: int                # input_size
    N: int                # output_size
    tk: int
    tn: int


def prepare_ignore_linear_params(weight, bias, *, tk=512, tn=512,
                                 compute_dtype=None):
    """Hoisted, once-per-module weight preprocessing.

    weight: (output_size, input_size) as in nn.Linear; bias: (output_size,).
    """
    N, K = weight.shape
    compute_dtype = jnp.dtype(compute_dtype or weight.dtype)

    # Clamp tiles to the (padded) problem; keep 128-lane alignment.  Default
    # 512 tiles are already multiples of 256 for the v6e/v7x 2x256 MXU.
    tk = min(tk, _round_up(K, 128))
    tn = min(tn, _round_up(N, 128))
    Kp = _round_up(K, tk)
    Np = _round_up(N, tn)

    w_t = weight.T.astype(compute_dtype)          # (K, N): kernel does x @ w
    if (Kp, Np) != (K, N):
        w_t = jnp.pad(w_t, ((0, Kp - K), (0, Np - N)))

    b2d = bias.reshape(1, N).astype(jnp.float32)  # bias added in f32
    if Np != N:
        b2d = jnp.pad(b2d, ((0, 0), (0, Np - N)))

    return IgnoreLinearParams(w_t, b2d, K, N, tk, tn)


# ----------------------------------------------------------------------------
# Kernels
# ----------------------------------------------------------------------------
def _linear_kernel_single(x_ref, w_ref, b_ref, o_ref):
    # Single-block fast path: whole problem in VMEM, no grid / accumulator.
    o_ref[...] = (
        jnp.dot(x_ref[...], w_ref[...], preferred_element_type=jnp.float32)
        + b_ref[...]
    ).astype(o_ref.dtype)


def _linear_kernel_f32_out(x_ref, w_ref, b_ref, o_ref):
    # f32 output: accumulate directly into o_ref (resident across the K axis).
    k = pl.program_id(2)

    @pl.when(k == 0)
    def _():
        o_ref[...] = jnp.broadcast_to(b_ref[...], o_ref.shape)

    o_ref[...] += jnp.dot(
        x_ref[...], w_ref[...], preferred_element_type=jnp.float32
    )


def _linear_kernel_acc(x_ref, w_ref, b_ref, o_ref, acc_ref):
    # Low-precision output: f32 scratch accumulator, cast on the last K step.
    k = pl.program_id(2)

    @pl.when(k == 0)
    def _():
        acc_ref[...] = jnp.broadcast_to(b_ref[...], acc_ref.shape)

    acc_ref[...] += jnp.dot(
        x_ref[...], w_ref[...], preferred_element_type=jnp.float32
    )

    @pl.when(k == pl.num_programs(2) - 1)
    def _():
        o_ref[...] = acc_ref[...].astype(o_ref.dtype)


# ----------------------------------------------------------------------------
# Forward
# ----------------------------------------------------------------------------
def ignore_linear_apply(t, x, params: IgnoreLinearParams, output_shape, *,
                        tm=512):
    """IgnoreLinear.forward(t, x) with pre-prepared weights. `t` is ignored."""
    del t  # IgnoreLinear drops the time argument entirely.

    K, N, tk, tn = params.K, params.N, params.tk, params.tn
    Kp, Np = params.w_padded.shape
    compute_dtype = params.w_padded.dtype
    out_dtype = x.dtype

    x_flat = x.reshape(-1, K)
    M = x_flat.shape[0]

    # Dtype-aware sublane alignment for the M (row) dimension.
    sub = _sublane_multiple(compute_dtype)
    tm = min(tm, _round_up(M, sub))
    Mp = _round_up(M, tm)

    x_c = x_flat.astype(compute_dtype)
    if (Mp, Kp) != (M, K):          # guard: skip the extra HBM pass if aligned
        x_c = jnp.pad(x_c, ((0, Mp - M), (0, Kp - K)))

    grid = (Mp // tm, Np // tn, Kp // tk)
    in_item = jnp.dtype(compute_dtype).itemsize
    out_item = jnp.dtype(out_dtype).itemsize

    if grid == (1, 1, 1):
        # Overhead-dominated regime (typical CNF layer): one block, one dot.
        out_padded = pl.pallas_call(
            _linear_kernel_single,
            out_shape=jax.ShapeDtypeStruct((Mp, Np), out_dtype),
        )(x_c, params.w_padded, params.b_padded)
    else:
        accumulate_in_out = jnp.dtype(out_dtype) == jnp.dtype(jnp.float32)
        kernel = _linear_kernel_f32_out if accumulate_in_out else _linear_kernel_acc
        scratch = [] if accumulate_in_out else [pltpu.VMEM((tm, tn), jnp.float32)]

        # Double-buffered VMEM footprint estimate; raise the scoped limit only
        # when a user-supplied tile config actually needs it (v5e default 16MiB,
        # v7x physical 64MiB -> cap at 48MiB).
        vmem_bytes = (
            2 * (tm * tk + tk * tn) * in_item          # x, w double-buffered
            + 2 * tm * tn * out_item                   # out double-buffered
            + (0 if accumulate_in_out else tm * tn * 4)
            + 2 * tn * 4                               # bias
        )
        compiler_kwargs = {}
        if vmem_bytes > 14 * 1024 * 1024:
            compiler_kwargs["vmem_limit_bytes"] = int(
                min(vmem_bytes * 3 // 2, 48 * 1024 * 1024)
            )

        cost = pl.CostEstimate(
            flops=2 * Mp * Np * Kp,
            transcendentals=0,
            bytes_accessed=(
                Mp * Kp * in_item * grid[1]     # x re-streamed per N tile
                + Kp * Np * in_item * grid[0]   # w re-streamed per M tile
                + Mp * Np * out_item
                + Np * 4
            ),
        )

        out_padded = pl.pallas_call(
            kernel,
            out_shape=jax.ShapeDtypeStruct((Mp, Np), out_dtype),
            grid=grid,
            in_specs=[
                pl.BlockSpec((tm, tk), lambda i, j, k: (i, k)),  # x tile
                pl.BlockSpec((tk, tn), lambda i, j, k: (k, j)),  # W^T tile
                pl.BlockSpec((1, tn), lambda i, j, k: (0, j)),   # bias tile
            ],
            out_specs=pl.BlockSpec((tm, tn), lambda i, j, k: (i, j)),
            scratch_shapes=scratch,
            compiler_params=pltpu.CompilerParams(
                dimension_semantics=("parallel", "parallel", "arbitrary"),
                **compiler_kwargs,
            ),
            cost_estimate=cost,
        )(x_c, params.w_padded, params.b_padded)

    out = out_padded if (Mp, Np) == (M, N) else out_padded[:M, :N]
    return out.reshape(-1, *output_shape)


def ignore_linear_forward(t, x, weight, bias, input_shape, output_shape, *,
                          tm=512, tn=512, tk=512, compute_dtype=None):
    """Convenience wrapper: prepare-per-call (ODE solvers should call
    `prepare_ignore_linear_params` once and reuse `ignore_linear_apply`)."""
    assert int(math.prod(input_shape)) == weight.shape[1]
    assert int(math.prod(output_shape)) == weight.shape[0]
    params = prepare_ignore_linear_params(
        weight, bias, tk=tk, tn=tn, compute_dtype=compute_dtype
    )
    return ignore_linear_apply(t, x, params, output_shape, tm=tm)


# ----------------------------------------------------------------------------
# Demo / correctness checks
# ----------------------------------------------------------------------------
if __name__ == "__main__":
    key = jax.random.PRNGKey(0)

    # ---- Case 1: module-sized problem -> single-block fast path -------------
    input_shape, output_shape, batch = (4, 8), (2, 8), 2
    input_size = int(math.prod(input_shape))
    output_size = int(math.prod(output_shape))
    k1, k2, k3, key = jax.random.split(key, 4)
    bound = 1.0 / math.sqrt(input_size)
    weight = jax.random.uniform(k1, (output_size, input_size), jnp.float32,
                                -bound, bound)
    bias = jax.random.uniform(k2, (output_size,), jnp.float32, -bound, bound)
    x = jax.random.normal(k3, (batch, *input_shape), jnp.float32)
    t = jnp.zeros((), jnp.float32)  # ignored

    y = ignore_linear_forward(t, x, weight, bias, input_shape, output_shape)
    y = jax.block_until_ready(y)
    y_ref = (x.reshape(-1, input_size) @ weight.T + bias).reshape(
        -1, *output_shape)
    assert y.shape == (batch, *output_shape)
    assert jnp.allclose(y, y_ref, atol=1e-5, rtol=1e-5)

    # ---- Case 2: multi-tile grid (f32, accumulate directly into o_ref) ------
    input_shape2, output_shape2, batch2 = (16, 16), (20, 16), 24
    in_sz2 = int(math.prod(input_shape2))    # K = 256
    out_sz2 = int(math.prod(output_shape2))  # N = 320
    k1, k2, k3, key = jax.random.split(key, 4)
    bound2 = 1.0 / math.sqrt(in_sz2)
    weight2 = jax.random.uniform(k1, (out_sz2, in_sz2), jnp.float32,
                                 -bound2, bound2)
    bias2 = jax.random.uniform(k2, (out_sz2,), jnp.float32, -bound2, bound2)
    x2 = jax.random.normal(k3, (batch2, *input_shape2), jnp.float32)

    params2 = prepare_ignore_linear_params(weight2, bias2, tk=128, tn=128)
    y2 = jax.block_until_ready(
        ignore_linear_apply(t, x2, params2, output_shape2, tm=8))
    y2_ref = (x2.reshape(-1, in_sz2) @ weight2.T + bias2).reshape(
        -1, *output_shape2)
    assert y2.shape == (batch2, *output_shape2)
    assert jnp.allclose(y2, y2_ref, atol=1e-4, rtol=1e-4)

    # ---- Case 3: bf16 MXU path (f32 accumulate, bf16 out, scratch kernel) ---
    x3 = x2.astype(jnp.bfloat16)
    params3 = prepare_ignore_linear_params(
        weight2, bias2, tk=128, tn=128, compute_dtype=jnp.bfloat16)
    y3 = jax.block_until_ready(
        ignore_linear_apply(t, x3, params3, output_shape2, tm=16))
    y3_ref = (x3.astype(jnp.float32).reshape(-1, in_sz2) @ weight2.T
              + bias2).reshape(-1, *output_shape2)
    assert y3.shape == (batch2, *output_shape2)
    assert jnp.allclose(y3.astype(jnp.float32), y3_ref, atol=3e-2, rtol=5e-2)

    print("KERNEL_OK")
</pallas_src>

<mosaic_0001>
module attributes {stable_mosaic.version = 11 : i64} {
  func.func @_linear_kernel_single(%arg0: memref<8x128xf32, #tpu.memory_space<vmem>>, %arg1: memref<128x128xf32, #tpu.memory_space<vmem>>, %arg2: memref<1x128xf32, #tpu.memory_space<vmem>>, %arg3: memref<8x128xf32, #tpu.memory_space<vmem>>) attributes {dimension_semantics = [], scalar_prefetch = 0 : i64, scratch_operands = 0 : i64, tpu.core_type = #tpu.core_type<tc>} {
    %c0 = arith.constant 0 : index
    %c0_0 = arith.constant 0 : index
    %0 = vector.load %arg0[%c0, %c0_0] : memref<8x128xf32, #tpu.memory_space<vmem>>, vector<8x128xf32>
    %c0_1 = arith.constant 0 : index
    %c0_2 = arith.constant 0 : index
    %1 = vector.load %arg1[%c0_1, %c0_2] : memref<128x128xf32, #tpu.memory_space<vmem>>, vector<128x128xf32>
    %cst = arith.constant dense<0.000000e+00> : vector<8x128xf32>
    %2 = tpu.matmul %0, %1, %cst {dimension_numbers = #tpu.dot_dimension_numbers<[1], [0], [0], [1], [0, 0, 1, 1], [], []>} : vector<8x128xf32>, vector<128x128xf32>, vector<8x128xf32> -> vector<8x128xf32>
    %c0_3 = arith.constant 0 : index
    %c0_4 = arith.constant 0 : index
    %3 = vector.load %arg2[%c0_3, %c0_4] : memref<1x128xf32, #tpu.memory_space<vmem>>, vector<1x128xf32>
    %4 = vector.broadcast %3 : vector<1x128xf32> to vector<8x128xf32>
    %5 = arith.addf %2, %4 : vector<8x128xf32>
    %c0_5 = arith.constant 0 : index
    %c0_6 = arith.constant 0 : index
    %6 = vector.load %arg3[%c0_5, %c0_6] : memref<8x128xf32, #tpu.memory_space<vmem>>, vector<8x128xf32>
    tpu.vector_store %arg3[%c0_5, %c0_6], %5 {strides = array<i32>} : memref<8x128xf32, #tpu.memory_space<vmem>>, vector<8x128xf32>,
    return
  }
}

</mosaic_0001>

<bundles_post_ra>
// kernel: tpu_custom_call.1
= control target key start
LH: loop header
LB: loop body
LE: loop exit
PB: predicated region body
PF: predicated region fallthrough
CT: control target
= control target key end

     0   :  { %8 = vsyncpa [#allocation3], 0  ;;  %s317_s0 = inlined_call_operand.hbm [shape: f32[8,128], index: 0, kind: input, shape index: {}]   ;;  %s318_s1 = inlined_call_operand.hbm [shape: f32[128,128], index: 1, kind: input, shape index: {}]   ;;  %s319_s2 = inlined_call_operand.vmem [shape: f32[1,128], index: 2, kind: input, shape index: {}]   ;;  %s320_s3 = inlined_call_operand.hbm [shape: f32[8,128], index: 3, kind: output, shape index: {}]  }
   0x1   :  { %9 = vsyncpa [#allocation6], 0 }
   0x2   :  { %10 = vsyncpa [#allocation4], 0  ;;  %s278_s12 = smov [#allocation2]   ;;  %s279_s14 = smov [#allocation5]  }
   0x3   :  { %s17_s13 = sshll.u32 %s278_s12, 4  ;;  %s26_s15 = sshll.u32 %s279_s14, 4  ;;  %s18_s13 = int_to_ptr.vmem [resolvable:$true] %s17_s13  ;;  %s27_s15 = int_to_ptr.vmem [resolvable:$true] %s26_s15 }
   0x4   :  { %s220_s16 = scalar_lea.vmem %s18_s13, 128  ;;  %p225_p1 = scmp.lt.s32.totalorder %s18_s13, %s18_s13 }
   0x5   :  { %p221_p0 = scmp.ne.s32.totalorder %s18_s13, %s220_s16  ;;  %p226_p2 = scmp.lt.s32.totalorder %s220_s16, %s220_s16 }
   0x7   :  { %p227_p3 = por %p226_p2, %p225_p1 }
   0x9   :  { %p228_p4 = pnand %p227_p3, %p221_p0 }
   0xb   :  { %231 = shalt.err (!%p228_p4)
}
   0xc   :  { %20 = dma.hbm_to_vmem [thread:$0]  %s317_s0, 128, %s18_s13, [#allocation3]  }
   0xd   :  { %s240_s19 = scalar_lea.vmem %s27_s15, 2048  ;;  %p245_p6 = scmp.lt.s32.totalorder %s27_s15, %s27_s15 }
   0xe   :  { %p241_p5 = scmp.ne.s32.totalorder %s27_s15, %s240_s19  ;;  %p246_p7 = scmp.lt.s32.totalorder %s240_s19, %s240_s19 }
  0x10   :  { %p247_p8 = por %p246_p7, %p245_p6 }
  0x12   :  { %p248_p9 = pnand %p247_p8, %p241_p5 }
  0x14   :  { %251 = shalt.err (!%p248_p9)
}
  0x15   :  { %s280_s20 = smov 128   ;;  %s281_s21 = smov 8  }
  0x16   :  { %32 = dma.hbm_to_vmem [thread:$0]  %s318_s1, 2048, %s27_s15, [#allocation6], %s280_s20, %s280_s20, %s281_s21  }
  0x17   :  { %272 = dma.done.wait [#allocation3], 128  }
  0x18   :  { %273 = vsyncadd [#allocation3], 4294967168 }
  0x19   :  { %274 = dma.done.wait [#allocation6], 2048  }
  0x1a   :  { %275 = vsyncadd [#allocation6], 4294965248  ;;  %v282_v0 = vmov 0.0   ;;  %vm283_vm0 = vmmov 0   ;;  %v57_v1 = vld [vmem:[#allocation5 + $0x78] sm:$0xff]  ;;  %v56_v2 = vld [vmem:[#allocation5 + $0x70] sm:$0xff] }
  0x1b   :  { %170 = vmatprep.subr.mxu0 %v282_v0  ;;  %202 = vmatprep.mubr.msk.f32.mxu0 %vm283_vm0, %v282_v0  ;;  %v55_v3 = vld [vmem:[#allocation5 + $0x68] sm:$0xff]  ;;  %v54_v4 = vld [vmem:[#allocation5 + $0x60] sm:$0xff]  ;;  %v53_v5 = vld [vmem:[#allocation5 + $0x58] sm:$0xff]  ;;  %s284_s24 = smov [#allocation7]  }
  0x1c   :  { %171 = vmatpush3.msra.mxu0 %v57_v1  ;;  %v52_v6 = vld [vmem:[#allocation5 + $0x50] sm:$0xff]  ;;  %v51_v7 = vld [vmem:[#allocation5 + $0x48] sm:$0xff]  ;;  %v50_v8 = vld [vmem:[#allocation5 + $0x40] sm:$0xff]  ;;  %s142_s25 = sshll.u32 %s284_s24, 4  ;;  %s143_s25 = int_to_ptr.vmem [resolvable:$true] %s142_s25 }
  0x1d   :  { %172 = vmatprep.subr.mxu0 %v282_v0  ;;  %v49_v9 = vld [vmem:[#allocation5 + $0x38] sm:$0xff]  ;;  %v48_v10 = vld [vmem:[#allocation5 + $0x30] sm:$0xff]  ;;  %v47_v11 = vld [vmem:[#allocation5 + $0x28] sm:$0xff]  ;;  %s252_s26 = scalar_lea.vmem %s143_s25, 128  ;;  %p257_p11 = scmp.lt.s32.totalorder %s143_s25, %s143_s25 }
  0x1e   :  { %173 = vmatpush3.msra.mxu0 %v56_v2  ;;  %v46_v12 = vld [vmem:[#allocation5 + $0x20] sm:$0xff]  ;;  %v45_v13 = vld [vmem:[#allocation5 + $0x18] sm:$0xff]  ;;  %v44_v14 = vld [vmem:[#allocation5 + $0x10] sm:$0xff]  ;;  %p253_p10 = scmp.ne.s32.totalorder %s143_s25, %s252_s26  ;;  %p258_p12 = scmp.lt.s32.totalorder %s252_s26, %s252_s26 }
  0x1f   :  { %174 = vmatprep.subr.mxu0 %v282_v0  ;;  %v43_v15 = vld [vmem:[#allocation5 + $0x8] sm:$0xff]  ;;  %v42_v16 = vld [vmem:[#allocation5] sm:$0xff]  ;;  %v41_v17 = vld [vmem:[#allocation2] sm:$0xff] }
  0x20   :  { %175 = vmatpush3.msra.mxu0 %v55_v3  ;;  %v152_v18 = vld [vmem:[%s319_s2] ss:$0 sm:$0xff]  ;;  %p259_p13 = por %p258_p12, %p257_p11 }
  0x21   :  { %176 = vmatprep.subr.mxu0 %v282_v0 }
  0x22   :  { %177 = vmatpush3.msra.mxu0 %v54_v4  ;;  %p260_p0 = pnand %p259_p13, %p253_p10 }
  0x23   :  { %178 = vmatprep.subr.mxu0 %v282_v0 }
  0x24   :  { %179 = vmatpush3.msra.mxu0 %v53_v5 }
  0x25   :  { %180 = vmatprep.subr.mxu0 %v282_v0 }
  0x26   :  { %181 = vmatpush3.msra.mxu0 %v52_v6 }
  0x27   :  { %182 = vmatprep.subr.mxu0 %v282_v0 }
  0x28   :  { %183 = vmatpush3.msra.mxu0 %v51_v7 }
  0x29   :  { %184 = vmatprep.subr.mxu0 %v282_v0 }
  0x2a   :  { %185 = vmatpush3.msra.mxu0 %v50_v8 }
  0x2b   :  { %186 = vmatprep.subr.mxu0 %v282_v0 }
  0x2c   :  { %187 = vmatpush3.msra.mxu0 %v49_v9 }
  0x2d   :  { %188 = vmatprep.subr.mxu0 %v282_v0 }
  0x2e   :  { %189 = vmatpush3.msra.mxu0 %v48_v10 }
  0x2f   :  { %190 = vmatprep.subr.mxu0 %v282_v0 }
  0x30   :  { %191 = vmatpush3.msra.mxu0 %v47_v11 }
  0x31   :  { %192 = vmatprep.subr.mxu0 %v282_v0 }
  0x32   :  { %193 = vmatpush3.msra.mxu0 %v46_v12 }
  0x33   :  { %194 = vmatprep.subr.mxu0 %v282_v0 }
  0x34   :  { %195 = vmatpush3.msra.mxu0 %v45_v13 }
  0x35   :  { %196 = vmatprep.subr.mxu0 %v282_v0 }
  0x36   :  { %197 = vmatpush3.msra.mxu0 %v44_v14 }
  0x37   :  { %198 = vmatprep.subr.mxu0 %v282_v0 }
  0x38   :  { %199 = vmatpush3.msra.mxu0 %v43_v15 }
  0x39   :  { %200 = vmatprep.subr.mxu0 %v282_v0 }
  0x3a   :  { %201 = vmatpush3.msra.mxu0 %v42_v16 }
  0x3b   :  { %203 = vmatmul.mubr.f32.vlgmr.msra.gmra.mxu0 %v41_v17 }
  0xfb   :  { %v131_v19 = vpop.f32.mrf.mxu0 }
  0xfc   :  { %v132_v20 = vadd.f32 %v152_v18, %v131_v19 }
  0xfd   :  { %v204_v21 = vpop.f32.mrf.mxu0 }
  0xfe   :  { %135 = vst [vmem:[#allocation7] sm:$0xff] %v132_v20 }
  0xff   :  { %263 = shalt.err (!%p260_p0)
}
 0x100   :  { %145 = dma.vmem_to_hbm [thread:$0]  %s143_s25, 128, %s320_s3, [#allocation4]  }
 0x101   :  { %276 = dma.done.wait [#allocation4], 128  }
 0x102   :  { %277 = vsyncadd [#allocation4], 4294967168 }
 0x103   :  { %149 = vsyncpa [#allocation3], 1 }
 0x104   :  { %150 = vsyncpa [#allocation6], 1 }
 0x105   :  { %151 = vsyncpa [#allocation4], 1 }

</bundles_post_ra>
